<compile_context>
chip_gen: v7x
topology: tpu7x:2x2x1
jax: 0.10.0
libtpu: 0.0.40
codegen_flags: <defaults>
</compile_context>

<pallas_src>
import functools

import jax
import jax.numpy as jnp
from jax.experimental import pallas as pl
from jax.experimental.pallas import tpu as pltpu

_LANES = 128
_MAX_TILE_ROWS = 512  # (512, 128) f32 tile = 256 KiB; 3 inputs x 2 buffers ~ 1.5 MiB


def _l1_kernel(has_fine, inv_m, *refs):
    """refs = (coef_ref[SMEM], coarse, [fine], targets, out[SMEM], acc[SMEM])."""
    if has_fine:
        coef_ref, c_ref, f_ref, t_ref, o_ref, acc_ref = refs
    else:
        coef_ref, c_ref, t_ref, o_ref, acc_ref = refs
        f_ref = None

    i = pl.program_id(0)

    @pl.when(i == 0)
    def _():
        acc_ref[0] = jnp.float32(0.0)

    t = t_ref[...]                              # (tile_rows, 128) f32
    d = jnp.abs(c_ref[...] - t)
    if has_fine:
        # sum(|dc|)/M + sum(|df|)/M == sum(|dc| + |df|)/M  -> single reduction
        d = d + jnp.abs(f_ref[...] - t)
    acc_ref[0] += jnp.sum(d)

    @pl.when(i == pl.num_programs(0) - 1)
    def _():
        o_ref[0, 0] = coef_ref[0] * acc_ref[0] * jnp.float32(inv_m)


def _round_up(x, m):
    return (x + m - 1) // m * m


def _flatten_pad(x, padded_m):
    """Flatten to f32 1-D, zero-pad to padded_m, reshape lane/sublane-dense."""
    flat = x.astype(jnp.float32).reshape(-1)
    pad = padded_m - flat.shape[0]
    if pad:
        flat = jnp.pad(flat, (0, pad))          # zero pad -> |0 - 0| adds nothing
    return flat.reshape(-1, _LANES)


def l1_loss(inputs, targets, coef=1.0):
    """inputs: dict with 'rgb_coarse' (N,3) and optionally 'rgb_fine' (N,3);
    targets: (1, N, 3). Returns scalar f32 loss = coef * (L1_coarse [+ L1_fine])."""
    has_fine = "rgb_fine" in inputs

    m = int(targets.size)                       # N*3 elements per mean
    rows_raw = pl.cdiv(m, _LANES)
    tile_rows = min(_MAX_TILE_ROWS, _round_up(rows_raw, 8))
    rows = _round_up(rows_raw, tile_rows)
    padded_m = rows * _LANES
    grid = (rows // tile_rows,)

    args = [_flatten_pad(inputs["rgb_coarse"], padded_m)]
    if has_fine:
        args.append(_flatten_pad(inputs["rgb_fine"], padded_m))
    args.append(_flatten_pad(targets, padded_m))

    coef_arr = jnp.full((1,), coef, dtype=jnp.float32)
    tile_spec = pl.BlockSpec((tile_rows, _LANES), lambda i, *_: (i, 0))

    out = pl.pallas_call(
        functools.partial(_l1_kernel, has_fine, 1.0 / float(m)),
        out_shape=jax.ShapeDtypeStruct((1, 1), jnp.float32),
        grid_spec=pltpu.PrefetchScalarGridSpec(
            num_scalar_prefetch=1,              # coef -> SMEM, no recompile per value
            grid=grid,
            in_specs=[tile_spec] * len(args),
            out_specs=pl.BlockSpec(memory_space=pltpu.SMEM),
            scratch_shapes=[pltpu.SMEM((1,), jnp.float32)],
        ),
        compiler_params=pltpu.CompilerParams(
            dimension_semantics=("arbitrary",),  # sequential reduction axis
        ),
    )(coef_arr, *args)
    return out[0, 0]


def _reference(inputs, targets, coef=1.0):
    """Plain-JAX reference mirroring the PyTorch L1Loss module."""
    t = jnp.squeeze(targets, axis=0)
    loss = jnp.mean(jnp.abs(inputs["rgb_coarse"] - t))
    if "rgb_fine" in inputs:
        loss = loss + jnp.mean(jnp.abs(inputs["rgb_fine"] - t))
    return coef * loss


if __name__ == "__main__":
    key = jax.random.PRNGKey(0)
    k1, k2, k3 = jax.random.split(key, 3)

    N = 256  # rays; N*3 = 768 elements -> (8, 128) padded slab, single grid step
    targets = jax.random.uniform(k1, (1, N, 3), dtype=jnp.float32)
    inputs = {
        "rgb_coarse": jax.random.uniform(k2, (N, 3), dtype=jnp.float32),
        "rgb_fine": jax.random.uniform(k3, (N, 3), dtype=jnp.float32),
    }

    # coarse + fine path
    loss = l1_loss(inputs, targets, coef=1.0)
    jax.block_until_ready(loss)
    ref = _reference(inputs, targets, coef=1.0)
    assert jnp.allclose(loss, ref, rtol=1e-5, atol=1e-6), (loss, ref)

    # coarse-only path
    loss_c = l1_loss({"rgb_coarse": inputs["rgb_coarse"]}, targets, coef=1.0)
    jax.block_until_ready(loss_c)
    ref_c = _reference({"rgb_coarse": inputs["rgb_coarse"]}, targets, coef=1.0)
    assert jnp.allclose(loss_c, ref_c, rtol=1e-5, atol=1e-6), (loss_c, ref_c)

    # different coef reuses the same compiled kernel (coef is SMEM data)
    loss_half = l1_loss(inputs, targets, coef=0.5)
    jax.block_until_ready(loss_half)
    ref_half = _reference(inputs, targets, coef=0.5)
    assert jnp.allclose(loss_half, ref_half, rtol=1e-5, atol=1e-6), (loss_half, ref_half)

    print("KERNEL_OK")
</pallas_src>

<mosaic_0001>
module attributes {stable_mosaic.version = 11 : i64} {
  func.func @_l1_kernel(%arg0: i32, %arg1: memref<1xf32, #tpu.memory_space<smem>>, %arg2: memref<8x128xf32, #tpu.memory_space<vmem>>, %arg3: memref<8x128xf32, #tpu.memory_space<vmem>>, %arg4: memref<8x128xf32, #tpu.memory_space<vmem>>, %arg5: memref<1x1xf32, #tpu.memory_space<smem>>, %arg6: memref<1xf32, #tpu.memory_space<smem>>) attributes {dimension_semantics = [#tpu.dimension_semantics<arbitrary>], iteration_bounds = array<i64: 1>, scalar_prefetch = 1 : i64, scratch_operands = 1 : i64, tpu.core_type = #tpu.core_type<tc>, window_params = [{transform_indices = @transform_0, window_bounds = array<i64: 8, 128>}, {transform_indices = @transform_1, window_bounds = array<i64: 8, 128>}, {transform_indices = @transform_2, window_bounds = array<i64: 8, 128>}, {transform_indices = @transform_3, window_bounds = array<i64: 1, 1>}]} {
    %c0_i32 = arith.constant 0 : i32
    %0 = arith.cmpi eq, %arg0, %c0_i32 : i32
    %1 = arith.extui %0 : i1 to i32
    %c0_i32_0 = arith.constant 0 : i32
    %2 = arith.cmpi ne, %1, %c0_i32_0 : i32
    scf.if %2 {
      %cst_10 = arith.constant 0.000000e+00 : f32
      %c0_11 = arith.constant 0 : index
      %21 = memref.load %arg6[%c0_11] : memref<1xf32, #tpu.memory_space<smem>>
      memref.store %cst_10, %arg6[%c0_11] : memref<1xf32, #tpu.memory_space<smem>>
    } else {
    }
    %c0 = arith.constant 0 : index
    %c0_1 = arith.constant 0 : index
    %3 = vector.load %arg4[%c0, %c0_1] : memref<8x128xf32, #tpu.memory_space<vmem>>, vector<8x128xf32>
    %c0_2 = arith.constant 0 : index
    %c0_3 = arith.constant 0 : index
    %4 = vector.load %arg2[%c0_2, %c0_3] : memref<8x128xf32, #tpu.memory_space<vmem>>, vector<8x128xf32>
    %5 = arith.subf %4, %3 : vector<8x128xf32>
    %6 = math.absf %5 : vector<8x128xf32>
    %c0_4 = arith.constant 0 : index
    %c0_5 = arith.constant 0 : index
    %7 = vector.load %arg3[%c0_4, %c0_5] : memref<8x128xf32, #tpu.memory_space<vmem>>, vector<8x128xf32>
    %8 = arith.subf %7, %3 : vector<8x128xf32>
    %9 = math.absf %8 : vector<8x128xf32>
    %10 = arith.addf %6, %9 : vector<8x128xf32>
    %c0_6 = arith.constant 0 : index
    %11 = memref.load %arg6[%c0_6] : memref<1xf32, #tpu.memory_space<smem>>
    %12 = vector.shape_cast %10 : vector<8x128xf32> to vector<1x8x128xf32>
    %cst = arith.constant dense<0.000000e+00> : vector<1xf32>
    %13 = vector.multi_reduction <add>, %12, %cst [1, 2] : vector<1x8x128xf32> to vector<1xf32>
    %14 = vector.shape_cast %13 : vector<1xf32> to vector<1x1x1xf32>
    %15 = vector.extract %14[0, 0, 0] : f32 from vector<1x1x1xf32>
    %16 = arith.addf %11, %15 : f32
    %c0_7 = arith.constant 0 : index
    %17 = memref.load %arg6[%c0_7] : memref<1xf32, #tpu.memory_space<smem>>
    memref.store %16, %arg6[%c0_7] : memref<1xf32, #tpu.memory_space<smem>>
    %c0_i32_8 = arith.constant 0 : i32
    %18 = arith.cmpi eq, %arg0, %c0_i32_8 : i32
    %19 = arith.extui %18 : i1 to i32
    %c0_i32_9 = arith.constant 0 : i32
    %20 = arith.cmpi ne, %19, %c0_i32_9 : i32
    scf.if %20 {
      %c0_10 = arith.constant 0 : index
      %21 = memref.load %arg1[%c0_10] : memref<1xf32, #tpu.memory_space<smem>>
      %c0_11 = arith.constant 0 : index
      %22 = memref.load %arg6[%c0_11] : memref<1xf32, #tpu.memory_space<smem>>
      %23 = arith.mulf %21, %22 : f32
      %cst_12 = arith.constant 0.00130208337 : f32
      %24 = arith.mulf %23, %cst_12 : f32
      %c0_13 = arith.constant 0 : index
      %c0_14 = arith.constant 0 : index
      %25 = memref.load %arg5[%c0_13, %c0_14] : memref<1x1xf32, #tpu.memory_space<smem>>
      memref.store %24, %arg5[%c0_13, %c0_14] : memref<1x1xf32, #tpu.memory_space<smem>>
    } else {
    }
    return
  }
  func.func @transform_0(%arg0: i32, %arg1: memref<1xf32, #tpu.memory_space<smem>>) -> (i32, i32) {
    %c0_i32 = arith.constant 0 : i32
    %c0_i32_0 = arith.constant 0 : i32
    return %arg0, %c0_i32 : i32, i32
  }
  func.func @transform_1(%arg0: i32, %arg1: memref<1xf32, #tpu.memory_space<smem>>) -> (i32, i32) {
    %c0_i32 = arith.constant 0 : i32
    %c0_i32_0 = arith.constant 0 : i32
    return %arg0, %c0_i32 : i32, i32
  }
  func.func @transform_2(%arg0: i32, %arg1: memref<1xf32, #tpu.memory_space<smem>>) -> (i32, i32) {
    %c0_i32 = arith.constant 0 : i32
    %c0_i32_0 = arith.constant 0 : i32
    return %arg0, %c0_i32 : i32, i32
  }
  func.func @transform_3(%arg0: i32, %arg1: memref<1xf32, #tpu.memory_space<smem>>) -> (i32, i32) {
    %c0_i32 = arith.constant 0 : i32
    %c0_i32_0 = arith.constant 0 : i32
    %c0_i32_1 = arith.constant 0 : i32
    return %c0_i32, %c0_i32_0 : i32, i32
  }
}

</mosaic_0001>

<bundles_post_ra>
// kernel: tpu_custom_call.1
= control target key start
LH: loop header
LB: loop body
LE: loop exit
PB: predicated region body
PF: predicated region fallthrough
CT: control target
= control target key end

     0   :  { %10 = vsyncpa [#allocation6], 0  ;;  %s227_s0 = inlined_call_operand.<no memory space> [shape: f32[1], index: 0, kind: input, shape index: {}]   ;;  %s228_s1 = inlined_call_operand.hbm [shape: f32[8,128], index: 1, kind: input, shape index: {}]   ;;  %s229_s2 = inlined_call_operand.hbm [shape: f32[8,128], index: 2, kind: input, shape index: {}]   ;;  %s230_s3 = inlined_call_operand.vmem [shape: f32[8,128], index: 3, kind: input, shape index: {}]   ;;  %s231_s4 = inlined_call_operand.hbm [shape: f32[1,1], index: 4, kind: output, shape index: {}]  }
   0x1   :  { %11 = vsyncpa [#allocation9], 0 }
   0x2   :  { %12 = vsyncpa [#allocation7], 0  ;;  %s157_s15 = smov [#allocation5]   ;;  %s158_s17 = smov [#allocation8]  }
   0x3   :  { %s19_s16 = sshll.u32 %s157_s15, 4  ;;  %s29_s18 = sshll.u32 %s158_s17, 4  ;;  %s20_s16 = int_to_ptr.vmem [resolvable:$true] %s19_s16  ;;  %s30_s18 = int_to_ptr.vmem [resolvable:$true] %s29_s18 }
   0x4   :  { %s97_s21 = scalar_lea.hbm %s228_s1, 128 }
   0x5   :  { %p98_p0 = scmp.ne.s32.totalorder %s228_s1, %s97_s21  ;;  %p101_p1 = scmp.lt.u32.totalorder %s97_s21, %s228_s1 }
   0x7   :  { %p103_p2 = pnand %p101_p1, %p98_p0 }
   0x9   :  { %106 = shalt.err (!%p103_p2)
}
   0xa   :  { %s107_s26 = scalar_lea.vmem %s20_s16, 128  ;;  %p112_p4 = scmp.lt.s32.totalorder %s20_s16, %s20_s16 }
   0xb   :  { %p108_p3 = scmp.ne.s32.totalorder %s20_s16, %s107_s26  ;;  %p113_p5 = scmp.lt.s32.totalorder %s107_s26, %s107_s26 }
   0xd   :  { %p114_p6 = por %p113_p5, %p112_p4 }
   0xf   :  { %p115_p7 = pnand %p114_p6, %p108_p3 }
  0x11   :  { %118 = shalt.err (!%p115_p7)
}
  0x12   :  { %22 = dma.hbm_to_vmem [thread:$0]  %s228_s1, 128, %s20_s16, [#allocation6]  }
  0x13   :  { %s119_s5 = scalar_lea.hbm %s229_s2, 128 }
  0x14   :  { %p120_p8 = scmp.ne.s32.totalorder %s229_s2, %s119_s5  ;;  %p123_p9 = scmp.lt.u32.totalorder %s119_s5, %s229_s2 }
  0x16   :  { %p125_p10 = pnand %p123_p9, %p120_p8 }
  0x18   :  { %128 = shalt.err (!%p125_p10)
}
  0x19   :  { %s129_s10 = scalar_lea.vmem %s30_s18, 128  ;;  %p134_p12 = scmp.lt.s32.totalorder %s30_s18, %s30_s18 }
  0x1a   :  { %p130_p11 = scmp.ne.s32.totalorder %s30_s18, %s129_s10  ;;  %p135_p13 = scmp.lt.s32.totalorder %s129_s10, %s129_s10 }
  0x1c   :  { %p136_p0 = por %p135_p13, %p134_p12 }
  0x1e   :  { %p137_p1 = pnand %p136_p0, %p130_p11 }
  0x20   :  { %140 = shalt.err (!%p137_p1)
}
  0x21   :  { %32 = dma.hbm_to_vmem [thread:$0]  %s229_s2, 128, %s30_s18, [#allocation9]  }
  0x22   :  { %151 = dma.done.wait [#allocation6], 128  }
  0x23   :  { %152 = vsyncadd [#allocation6], 4294967168 }
  0x24   :  { %153 = dma.done.wait [#allocation9], 128  }
  0x25   :  { %154 = vsyncadd [#allocation9], 4294967168  ;;  %v47_v0 = vld [vmem:[%s230_s3] sm:$0xff]  ;;  %v51_v2 = vld [vmem:[#allocation8] sm:$0xff]  ;;  %s141_s19 = scalar_lea.hbm %s231_s4, 16 }
  0x26   :  { %v48_v1 = vld [vmem:[#allocation5] sm:$0xff]  ;;  %v52_v4 = vsub.f32 %v51_v2, %v47_v0  ;;  %p142_p2 = scmp.ne.s32.totalorder %s231_s4, %s141_s19  ;;  %p145_p3 = scmp.lt.u32.totalorder %s141_s19, %s231_s4 }
  0x27   :  { %v49_v3 = vsub.f32 %v48_v1, %v47_v0 }
  0x28   :  { %v53_v6 = vand.u32 2147483647, %v52_v4  ;;  %p147_p4 = pnand %p145_p3, %p142_p2 }
  0x29   :  { %v50_v5 = vand.u32 2147483647, %v49_v3 }
  0x2b   :  { %v54_v7 = vadd.f32 %v53_v6, %v50_v5 }
  0x2d   :  { %56 = vadd.xlane.f32.xlu0 %v54_v7 }
  0xba   :  { %v57_v8 = vpop.xlane.xlu0 %56 }
  0xbb   :  { %v58_v9 = vrot.slane %v57_v8, 4 }
  0xbd   :  { %v59_v10 = vadd.f32 %v58_v9, %v57_v8 }
  0xbf   :  { %v60_v11 = vrot.slane %v59_v10, 2 }
  0xc1   :  { %v61_v12 = vadd.f32 %v60_v11, %v59_v10 }
  0xc3   :  { %v62_v13 = vrot.slane %v61_v12, 1 }
  0xc5   :  { %v63_v14 = vadd.f32 %v62_v13, %v61_v12 }
  0xc7   :  { %92 = vpush %v63_v14 }
  0xf8   :  { %s93_s2 = spop %92 }
  0xf9   :  { %s73_s3 = smul.f32 %s93_s2, %s227_s0 }
  0xfb   :  { %s74_s16 = smul.f32 0.0013020834, %s73_s3 }
  0xfd   :  { %76 = sst [smem:[#allocation10]] %s74_s16 }
  0xfe   :  { %150 = shalt.err (!%p147_p4)
}
  0xff   :  { %s159_s24 = smov [#allocation10]  }
 0x100   :  { %84 = dma.smem_to_hbm %s159_s24, 16, %s231_s4, [#allocation7]  }
 0x101   :  { %155 = dma.done.wait [#allocation7], 16  }
 0x102   :  { %156 = vsyncadd [#allocation7], 4294967280 }
 0x103   :  { %88 = sfence }
 0x104   :  { %89 = vsyncpa [#allocation6], 1 }
 0x105   :  { %90 = vsyncpa [#allocation9], 1 }
 0x106   :  { %91 = vsyncpa [#allocation7], 1 }

</bundles_post_ra>
